<compile_context>
chip_gen: v5e
topology: v5e:2x2
jax: 0.10.0
libtpu: 0.0.40
codegen_flags: <defaults>
</compile_context>

<pallas_src>
import functools

import jax
import jax.numpy as jnp
from jax import lax
from jax.experimental import pallas as pl
from jax.experimental.pallas import tpu as pltpu

H1 = 256          # first hidden width
H2 = 64           # second hidden width
BN_EPS = 1e-5


# ---------------------------------------------------------------------------
# Fully fused kernel (single tile / whole batch resident in VMEM).
# ---------------------------------------------------------------------------
def _fused_kernel(x_ref, w1_ref, b1_ref, gamma_ref, beta_ref,
                  w2_ref, b2_ref, w3_ref, b3_ref, o_ref, *, batch):
    h1 = jnp.dot(x_ref[...], w1_ref[...], preferred_element_type=jnp.float32)
    h1 = jnp.maximum(h1 + b1_ref[...], 0.0)

    # Training-mode BatchNorm statistics over the full batch, two-pass
    # (centered) variance -> numerically robust.
    inv_n = 1.0 / batch
    if batch >= 8:
        # Axis-0 reduction on the otherwise-idle MXU: ones[1,B] @ h1.
        ones = jnp.ones((1, batch), jnp.float32)
        mean = jnp.dot(ones, h1, preferred_element_type=jnp.float32) * inv_n
        centered = h1 - mean
        var = jnp.dot(ones, centered * centered,
                      preferred_element_type=jnp.float32) * inv_n
    else:
        mean = jnp.sum(h1, axis=0, keepdims=True) * inv_n
        centered = h1 - mean
        var = jnp.sum(centered * centered, axis=0, keepdims=True) * inv_n

    inv_std = lax.rsqrt(var + BN_EPS)
    scale = gamma_ref[...] * inv_std
    shift = beta_ref[...] - mean * scale
    hbn = h1 * scale + shift

    h2 = jnp.dot(hbn.astype(w2_ref.dtype), w2_ref[...],
                 preferred_element_type=jnp.float32) + b2_ref[...]
    h2 = jnp.maximum(h2, 0.0)

    # Linear(64, 1): elementwise multiply + lane reduction -> [B, 1] output
    # (only B*4 bytes written back to HBM).
    o = jnp.sum(h2 * w3_ref[...], axis=1, keepdims=True) + b3_ref[...]
    o_ref[...] = o.astype(o_ref.dtype)


# ---------------------------------------------------------------------------
# Stage 1 (tiled path): h1 = relu(x @ W1 + b1) + per-tile centered BN partials.
# ---------------------------------------------------------------------------
def _stage1_kernel(x_ref, w1_ref, b1_ref, h1_ref, sum_ref, m2_ref,
                   *, batch, tile_b):
    h1 = jnp.dot(x_ref[...], w1_ref[...], preferred_element_type=jnp.float32)
    h1 = jnp.maximum(h1 + b1_ref[...], 0.0)
    # h1 is the dominant HBM traffic of both kernels: store it in
    # compute_dtype (bf16 by default); statistics below use the f32 value.
    h1_ref[...] = h1.astype(h1_ref.dtype)

    rem = batch % tile_b
    if rem != 0:
        # Mask batch-padding rows out of the statistics (last tile only).
        tile_start = pl.program_id(0) * tile_b
        row = lax.broadcasted_iota(jnp.int32, (tile_b, 1), 0)
        valid = ((tile_start + row) < batch).astype(jnp.float32)
        h1 = h1 * valid
        inv_n = 1.0 / jnp.minimum(tile_b, batch - tile_start).astype(jnp.float32)
    else:
        inv_n = 1.0 / tile_b

    def _colsum(v):
        if tile_b >= 8:
            # Axis-0 reduction on the otherwise-idle MXU.
            return jnp.dot(jnp.ones((1, tile_b), jnp.float32), v,
                           preferred_element_type=jnp.float32)
        return jnp.sum(v, axis=0, keepdims=True)

    psum = _colsum(h1)
    centered = h1 - psum * inv_n          # center around the tile mean
    if rem != 0:
        centered = centered * valid
    m2 = _colsum(centered * centered)

    sum_ref[...] = psum[None]
    m2_ref[...] = m2[None]


# ---------------------------------------------------------------------------
# Stage 2 (tiled path): relu(h1 @ W2' + b2') -> Linear(64,1) lane reduction.
# BN scale/shift are already folded into W2'/b2' (exact).
# ---------------------------------------------------------------------------
def _stage2_kernel(h1_ref, w2_ref, b2_ref, w3_ref, b3_ref, o_ref):
    h2 = jnp.dot(h1_ref[...], w2_ref[...],
                 preferred_element_type=jnp.float32) + b2_ref[...]
    h2 = jnp.maximum(h2, 0.0)
    o = jnp.sum(h2 * w3_ref[...], axis=1, keepdims=True) + b3_ref[...]
    o_ref[...] = o.astype(o_ref.dtype)


def _select_tiling(feat, itemsize):
    """Generation- and dtype-aware batch-tile / VMEM-limit selection."""
    try:
        phys = int(pltpu.get_tpu_info().vmem_capacity_bytes)
    except Exception:                       # query unavailable -> conservative
        phys = 64 * 1024 * 1024             # v7x per-TensorCore VMEM
    # Lift v5e's 16 MiB scoped default; stay well under physical capacity
    # (96 MiB on 128 MiB v5e/v6e parts, 48 MiB on 64 MiB v7x parts).
    vmem_limit = int(min(max(3 * phys // 4, 32 << 20), 96 << 20))
    # Resident weights; assume the pipeline still double-buffers the
    # constant-index W1/W2 blocks (pl.Buffered(1) not used, for API safety).
    resident = 2 * feat * H1 * itemsize + 2 * H1 * H2 * 4 + (1 << 20)
    budget = max(2 << 20, vmem_limit - resident - (8 << 20))
    # Per batch-row streamed bytes: double-buffered x + h1 tiles plus the
    # in-register f32 working set for h1 / centered / hbn.
    per_row = 2 * feat * itemsize + 2 * H1 * itemsize + 3 * H1 * 4
    cap = 2048 if phys >= (96 << 20) else 512
    tb = max(8, min(cap, (budget // per_row) // 8 * 8))
    return int(tb), vmem_limit


def projection_forward(dec_outputs, params, *, compute_dtype=jnp.bfloat16,
                       tile_b=None):
    """dec_outputs: [B, tgt_len, d_model] -> [B, 1] float32."""
    B = dec_outputs.shape[0]
    x = dec_outputs.reshape(B, -1).astype(jnp.float32)   # == torch .view(B,-1)
    F = x.shape[1]
    w1, b1, gamma, beta, w2, b2, w3, b3 = params

    itemsize = jnp.dtype(compute_dtype).itemsize
    tb_auto, vmem_limit = _select_tiling(F, itemsize)
    tb = int(tile_b) if tile_b is not None else tb_auto

    # bf16 storage (default) for the big operands halves HBM traffic; all
    # accumulation stays f32 via preferred_element_type.
    x_c = x.astype(compute_dtype)
    w1_c = w1.astype(compute_dtype)
    b1_r = jnp.reshape(b1, (1, H1)).astype(jnp.float32)
    gamma_r = jnp.reshape(gamma, (1, H1)).astype(jnp.float32)
    beta_r = jnp.reshape(beta, (1, H1)).astype(jnp.float32)
    b2_r = jnp.reshape(b2, (1, H2)).astype(jnp.float32)
    w3_r = jnp.reshape(w3, (1, H2)).astype(jnp.float32)
    b3_r = jnp.reshape(b3, (1, 1)).astype(jnp.float32)

    if B <= tb:
        # ---- Fully fused single-kernel path (no h1 HBM round trip). ----
        w2_c = w2.astype(compute_dtype)
        cost = pl.CostEstimate(
            flops=2 * B * F * H1 + 2 * B * H1 * H2 + 12 * B * H1,
            transcendentals=0,
            bytes_accessed=(B * F + F * H1 + H1 * H2) * itemsize + B * 4,
        )
        return pl.pallas_call(
            functools.partial(_fused_kernel, batch=B),
            out_shape=jax.ShapeDtypeStruct((B, 1), jnp.float32),
            compiler_params=pltpu.CompilerParams(vmem_limit_bytes=vmem_limit),
            cost_estimate=cost,
        )(x_c, w1_c, b1_r, gamma_r, beta_r, w2_c, b2_r, w3_r, b3_r)

    # ---- Two-stage tiled path (large batches). ----
    tb = max(8, ((tb + 7) // 8) * 8)
    num_tiles = pl.cdiv(B, tb)
    Bp = num_tiles * tb
    if Bp != B:
        x_c = jnp.pad(x_c, ((0, Bp - B), (0, 0)))

    cparams = pltpu.CompilerParams(
        dimension_semantics=("parallel",),    # megacore-shardable grid axis
        vmem_limit_bytes=vmem_limit,
    )

    cost1 = pl.CostEstimate(
        flops=2 * Bp * F * H1 + 12 * Bp * H1,
        transcendentals=0,
        bytes_accessed=(Bp * F + F * H1 + Bp * H1) * itemsize
        + (2 * num_tiles * H1 + H1) * 4,
    )
    h1_full, part_sum, part_m2 = pl.pallas_call(
        functools.partial(_stage1_kernel, batch=B, tile_b=tb),
        grid=(num_tiles,),
        in_specs=[
            pl.BlockSpec((tb, F), lambda i: (i, 0)),      # x: streamed per tile
            pl.BlockSpec((F, H1), lambda i: (0, 0)),      # W1: VMEM-resident
            pl.BlockSpec((1, H1), lambda i: (0, 0)),      # b1: VMEM-resident
        ],
        out_specs=[
            pl.BlockSpec((tb, H1), lambda i: (i, 0)),
            pl.BlockSpec((1, 1, H1), lambda i: (i, 0, 0)),
            pl.BlockSpec((1, 1, H1), lambda i: (i, 0, 0)),
        ],
        out_shape=[
            jax.ShapeDtypeStruct((Bp, H1), compute_dtype),   # bf16 h1 storage
            jax.ShapeDtypeStruct((num_tiles, 1, H1), jnp.float32),
            jax.ShapeDtypeStruct((num_tiles, 1, H1), jnp.float32),
        ],
        compiler_params=cparams,
        cost_estimate=cost1,
    )(x_c, w1_c, b1_r)

    # Chan's parallel-variance combine of the per-tile centered partials ->
    # exact full-batch training-mode BN stats; then fold BN exactly into
    # W2/b2 (there is no nonlinearity between BatchNorm and Linear(256,64)).
    starts = jnp.arange(num_tiles, dtype=jnp.float32) * tb
    n_i = jnp.minimum(float(tb), float(B) - starts)            # rows per tile
    sums = part_sum[:, 0, :]
    m2s = part_m2[:, 0, :]
    mean_i = sums / n_i[:, None]
    mean = jnp.sum(sums, axis=0) / B
    m2 = jnp.sum(m2s, axis=0) + jnp.sum(
        n_i[:, None] * (mean_i - mean[None, :]) ** 2, axis=0)
    var = m2 / B                                # biased (PyTorch BN normalization)
    inv_std = lax.rsqrt(var + BN_EPS)
    scale = gamma.reshape(-1) * inv_std
    shift = beta.reshape(-1) - mean * scale
    w2_f = (w2 * scale[:, None]).astype(compute_dtype)
    b2_f = (b2.reshape(-1) + shift @ w2).reshape(1, H2).astype(jnp.float32)

    cost2 = pl.CostEstimate(
        flops=2 * Bp * H1 * H2 + 4 * Bp * H2,
        transcendentals=0,
        bytes_accessed=Bp * H1 * itemsize + H1 * H2 * itemsize + Bp * 4,
    )
    out = pl.pallas_call(
        _stage2_kernel,
        grid=(num_tiles,),
        in_specs=[
            pl.BlockSpec((tb, H1), lambda i: (i, 0)),     # h1: streamed per tile
            pl.BlockSpec((H1, H2), lambda i: (0, 0)),     # BN-folded W2: resident
            pl.BlockSpec((1, H2), lambda i: (0, 0)),      # BN-folded b2
            pl.BlockSpec((1, H2), lambda i: (0, 0)),      # w3 as a row
            pl.BlockSpec((1, 1), lambda i: (0, 0)),       # b3
        ],
        out_specs=pl.BlockSpec((tb, 1), lambda i: (i, 0)),
        out_shape=jax.ShapeDtypeStruct((Bp, 1), jnp.float32),
        compiler_params=cparams,
        cost_estimate=cost2,
    )(h1_full, w2_f, b2_f, w3_r, b3_r)

    return out[:B]


def init_params(key, d_model, tgt_len):
    """Deterministic synthetic parameters (PyTorch-default-style uniform)."""
    F = tgt_len * d_model
    ks = jax.random.split(key, 6)

    def lin(kw, kb, fan_in, fan_out):
        bound = 1.0 / float(fan_in) ** 0.5
        # stored as [in, out] so the kernel computes x @ W
        w = jax.random.uniform(kw, (fan_in, fan_out), jnp.float32, -bound, bound)
        b = jax.random.uniform(kb, (1, fan_out), jnp.float32, -bound, bound)
        return w, b

    w1, b1 = lin(ks[0], ks[1], F, H1)
    w2, b2 = lin(ks[2], ks[3], H1, H2)
    w3, b3 = lin(ks[4], ks[5], H2, 1)
    gamma = jnp.ones((1, H1), jnp.float32)    # BatchNorm1d default init
    beta = jnp.zeros((1, H1), jnp.float32)
    return (w1, b1, gamma, beta, w2, b2, w3, b3)


def reference_forward(dec_outputs, params, compute_dtype=jnp.float32):
    """Plain-JAX reference mirroring the PyTorch module (training-mode BN,
    centered variance).  `compute_dtype` quantizes x/W1/W2 the way the
    kernel does so the bf16 path can be checked at a meaningful tolerance."""
    w1, b1, gamma, beta, w2, b2, w3, b3 = params
    q = lambda a: a.astype(compute_dtype).astype(jnp.float32)
    hp = lax.Precision.HIGHEST
    x = q(dec_outputs.reshape(dec_outputs.shape[0], -1))
    h1 = jnp.maximum(jnp.dot(x, q(w1), precision=hp) + b1, 0.0)
    mean = jnp.mean(h1, axis=0, keepdims=True)
    var = jnp.mean((h1 - mean) ** 2, axis=0, keepdims=True)
    hbn = (h1 - mean) * lax.rsqrt(var + BN_EPS) * gamma + beta
    h2 = jnp.maximum(jnp.dot(hbn, q(w2), precision=hp) + b2, 0.0)
    return jnp.dot(h2, w3, precision=hp) + b3


if __name__ == "__main__":
    d_model, tgt_len, batch = 32, 8, 2
    key = jax.random.PRNGKey(0)
    k_x, k_p, k_x2 = jax.random.split(key, 3)

    dec_outputs = jax.random.normal(k_x, (batch, tgt_len, d_model), jnp.float32)
    params = init_params(k_p, d_model, tgt_len)

    batch2 = 20
    dec2 = jax.random.normal(k_x2, (batch2, tgt_len, d_model), jnp.float32)

    # NOTE on tolerances: BatchNorm over a batch of 2 amplifies tiny matmul
    # rounding differences (1/sqrt(var+eps) can be ~300x for near-degenerate
    # channels), so checks are intentionally looser than f32 ulp; real
    # implementation bugs produce errors orders of magnitude larger.

    # --- f32 fused single-kernel path (decode case, B=2) ---
    out = jax.block_until_ready(
        projection_forward(dec_outputs, params, compute_dtype=jnp.float32))
    ref = reference_forward(dec_outputs, params)
    assert out.shape == (batch, 1)
    assert jnp.allclose(out, ref, atol=4e-2, rtol=4e-2), (out, ref)

    # --- f32 two-stage tiled path with batch padding / masking ---
    out2 = jax.block_until_ready(
        projection_forward(dec2, params, compute_dtype=jnp.float32, tile_b=8))
    ref2 = reference_forward(dec2, params)
    assert out2.shape == (batch2, 1)
    assert jnp.allclose(out2, ref2, atol=1e-2, rtol=1e-2), (out2, ref2)

    # --- default bf16 fused path (vs. quantization-aware reference) ---
    out_bf = jax.block_until_ready(projection_forward(dec_outputs, params))
    ref_bf = reference_forward(dec_outputs, params, compute_dtype=jnp.bfloat16)
    assert out_bf.shape == (batch, 1)
    assert jnp.allclose(out_bf, ref_bf, atol=4e-2, rtol=4e-2), (out_bf, ref_bf)

    # --- bf16 two-stage path (exercises bf16 h1 storage between stages) ---
    out2_bf = jax.block_until_ready(projection_forward(dec2, params, tile_b=8))
    ref2_bf = reference_forward(dec2, params, compute_dtype=jnp.bfloat16)
    assert out2_bf.shape == (batch2, 1)
    assert jnp.allclose(out2_bf, ref2_bf, atol=5e-2, rtol=5e-2), (out2_bf, ref2_bf)

    print("KERNEL_OK")
</pallas_src>

<mosaic_0001>
module attributes {stable_mosaic.version = 11 : i64} {
  func.func @_fused_kernel(%arg0: memref<2x256xf32, #tpu.memory_space<vmem>>, %arg1: memref<256x256xf32, #tpu.memory_space<vmem>>, %arg2: memref<1x256xf32, #tpu.memory_space<vmem>>, %arg3: memref<1x256xf32, #tpu.memory_space<vmem>>, %arg4: memref<1x256xf32, #tpu.memory_space<vmem>>, %arg5: memref<256x64xf32, #tpu.memory_space<vmem>>, %arg6: memref<1x64xf32, #tpu.memory_space<vmem>>, %arg7: memref<1x64xf32, #tpu.memory_space<vmem>>, %arg8: memref<1x1xf32, #tpu.memory_space<vmem>>, %arg9: memref<2x1xf32, #tpu.memory_space<vmem>>) attributes {dimension_semantics = [], scalar_prefetch = 0 : i64, scratch_operands = 0 : i64, tpu.core_type = #tpu.core_type<tc>} {
    %c0 = arith.constant 0 : index
    %c0_0 = arith.constant 0 : index
    %0 = vector.load %arg0[%c0, %c0_0] : memref<2x256xf32, #tpu.memory_space<vmem>>, vector<2x256xf32>
    %c0_1 = arith.constant 0 : index
    %c0_2 = arith.constant 0 : index
    %1 = vector.load %arg1[%c0_1, %c0_2] : memref<256x256xf32, #tpu.memory_space<vmem>>, vector<256x256xf32>
    %cst = arith.constant dense<0.000000e+00> : vector<2x256xf32>
    %2 = tpu.matmul %0, %1, %cst {dimension_numbers = #tpu.dot_dimension_numbers<[1], [0], [0], [1], [0, 0, 1, 1], [], []>} : vector<2x256xf32>, vector<256x256xf32>, vector<2x256xf32> -> vector<2x256xf32>
    %c0_3 = arith.constant 0 : index
    %c0_4 = arith.constant 0 : index
    %3 = vector.load %arg2[%c0_3, %c0_4] : memref<1x256xf32, #tpu.memory_space<vmem>>, vector<1x256xf32>
    %4 = vector.broadcast %3 : vector<1x256xf32> to vector<2x256xf32>
    %5 = arith.addf %2, %4 : vector<2x256xf32>
    %cst_5 = arith.constant 0.000000e+00 : f32
    %6 = vector.broadcast %cst_5 : f32 to vector<2x256xf32>
    %7 = arith.maximumf %5, %6 : vector<2x256xf32>
    %cst_6 = arith.constant dense<0.000000e+00> : vector<256xf32>
    %8 = vector.multi_reduction <add>, %7, %cst_6 [0] : vector<2x256xf32> to vector<256xf32>
    %9 = vector.shape_cast %8 : vector<256xf32> to vector<1x256xf32>
    %cst_7 = arith.constant 5.000000e-01 : f32
    %10 = vector.broadcast %cst_7 : f32 to vector<1x256xf32>
    %11 = arith.mulf %9, %10 : vector<1x256xf32>
    %12 = vector.broadcast %11 : vector<1x256xf32> to vector<2x256xf32>
    %13 = arith.subf %7, %12 : vector<2x256xf32>
    %14 = arith.mulf %13, %13 : vector<2x256xf32>
    %cst_8 = arith.constant dense<0.000000e+00> : vector<256xf32>
    %15 = vector.multi_reduction <add>, %14, %cst_8 [0] : vector<2x256xf32> to vector<256xf32>
    %16 = vector.shape_cast %15 : vector<256xf32> to vector<1x256xf32>
    %cst_9 = arith.constant 5.000000e-01 : f32
    %17 = vector.broadcast %cst_9 : f32 to vector<1x256xf32>
    %18 = arith.mulf %16, %17 : vector<1x256xf32>
    %cst_10 = arith.constant 9.99999974E-6 : f32
    %19 = vector.broadcast %cst_10 : f32 to vector<1x256xf32>
    %20 = arith.addf %18, %19 : vector<1x256xf32>
    %21 = math.rsqrt %20 : vector<1x256xf32>
    %c0_11 = arith.constant 0 : index
    %c0_12 = arith.constant 0 : index
    %22 = vector.load %arg3[%c0_11, %c0_12] : memref<1x256xf32, #tpu.memory_space<vmem>>, vector<1x256xf32>
    %23 = arith.mulf %22, %21 : vector<1x256xf32>
    %c0_13 = arith.constant 0 : index
    %c0_14 = arith.constant 0 : index
    %24 = vector.load %arg4[%c0_13, %c0_14] : memref<1x256xf32, #tpu.memory_space<vmem>>, vector<1x256xf32>
    %25 = arith.mulf %11, %23 : vector<1x256xf32>
    %26 = arith.subf %24, %25 : vector<1x256xf32>
    %27 = vector.broadcast %23 : vector<1x256xf32> to vector<2x256xf32>
    %28 = arith.mulf %7, %27 : vector<2x256xf32>
    %29 = vector.broadcast %26 : vector<1x256xf32> to vector<2x256xf32>
    %30 = arith.addf %28, %29 : vector<2x256xf32>
    %c0_15 = arith.constant 0 : index
    %c0_16 = arith.constant 0 : index
    %31 = vector.load %arg5[%c0_15, %c0_16] : memref<256x64xf32, #tpu.memory_space<vmem>>, vector<256x64xf32>
    %cst_17 = arith.constant dense<0.000000e+00> : vector<2x64xf32>
    %32 = tpu.matmul %30, %31, %cst_17 {dimension_numbers = #tpu.dot_dimension_numbers<[1], [0], [0], [1], [0, 0, 1, 1], [], []>} : vector<2x256xf32>, vector<256x64xf32>, vector<2x64xf32> -> vector<2x64xf32>
    %c0_18 = arith.constant 0 : index
    %c0_19 = arith.constant 0 : index
    %33 = vector.load %arg6[%c0_18, %c0_19] : memref<1x64xf32, #tpu.memory_space<vmem>>, vector<1x64xf32>
    %34 = vector.broadcast %33 : vector<1x64xf32> to vector<2x64xf32>
    %35 = arith.addf %32, %34 : vector<2x64xf32>
    %cst_20 = arith.constant 0.000000e+00 : f32
    %36 = vector.broadcast %cst_20 : f32 to vector<2x64xf32>
    %37 = arith.maximumf %35, %36 : vector<2x64xf32>
    %c0_21 = arith.constant 0 : index
    %c0_22 = arith.constant 0 : index
    %38 = vector.load %arg7[%c0_21, %c0_22] : memref<1x64xf32, #tpu.memory_space<vmem>>, vector<1x64xf32>
    %39 = vector.broadcast %38 : vector<1x64xf32> to vector<2x64xf32>
    %40 = arith.mulf %37, %39 : vector<2x64xf32>
    %cst_23 = arith.constant dense<0.000000e+00> : vector<2xf32>
    %41 = vector.multi_reduction <add>, %40, %cst_23 [1] : vector<2x64xf32> to vector<2xf32>
    %42 = vector.shape_cast %41 : vector<2xf32> to vector<2x1xf32>
    %c0_24 = arith.constant 0 : index
    %c0_25 = arith.constant 0 : index
    %43 = vector.load %arg8[%c0_24, %c0_25] : memref<1x1xf32, #tpu.memory_space<vmem>>, vector<1x1xf32>
    %44 = vector.broadcast %43 : vector<1x1xf32> to vector<2x1xf32>
    %45 = arith.addf %42, %44 : vector<2x1xf32>
    %c0_26 = arith.constant 0 : index
    %c0_27 = arith.constant 0 : index
    %46 = vector.load %arg9[%c0_26, %c0_27] : memref<2x1xf32, #tpu.memory_space<vmem>>, vector<2x1xf32>
    tpu.vector_store %arg9[%c0_26, %c0_27], %45 {strides = array<i32>} : memref<2x1xf32, #tpu.memory_space<vmem>>, vector<2x1xf32>,
    return
  }
}

</mosaic_0001>

<bundles_post_ra>
// kernel: tpu_custom_call.1
= control target key start
LH: loop header
LB: loop body
LE: loop exit
PB: predicated region body
PF: predicated region fallthrough
CT: control target
= control target key end

     0   :  { %s631_s0 = inlined_call_operand.vmem [shape: f32[2,256], index: 0, kind: input, shape index: {}]   ;;  %s632_s1 = inlined_call_operand.hbm [shape: f32[256,256], index: 1, kind: input, shape index: {}]   ;;  %s633_s2 = inlined_call_operand.vmem [shape: f32[1,256], index: 2, kind: input, shape index: {}]   ;;  %s634_s3 = inlined_call_operand.vmem [shape: f32[1,256], index: 3, kind: input, shape index: {}]   ;;  %s635_s4 = inlined_call_operand.vmem [shape: f32[1,256], index: 4, kind: input, shape index: {}]   ;;  %s636_s5 = inlined_call_operand.vmem [shape: f32[256,64], index: 5, kind: input, shape index: {}]   ;;  %s637_s6 = inlined_call_operand.vmem [shape: f32[1,64], index: 6, kind: input, shape index: {}]   ;;  %s638_s7 = inlined_call_operand.vmem [shape: f32[1,64], index: 7, kind: input, shape index: {}]   ;;  %s639_s8 = inlined_call_operand.<no memory space> [shape: f32[1,1], index: 8, kind: input, shape index: {}]   ;;  %s640_s9 = inlined_call_operand.vmem [shape: f32[2,1], index: 9, kind: output, shape index: {}]  }
   0x1   :  { %v14_v0 = vstv %s639_s8 }
   0x2   :  { %15 = vst [vmem:[#allocation2] sm:$0x1] %v14_v0 }
   0x3   :  { %16 = vsyncpa [#allocation4], 0  ;;  %s23_s13 = sshll.u32 %s632_s1, 4  ;;  %s433_s14 = smov [#allocation3]   ;;  %s24_s13 = int_to_ptr.hbm [resolvable:$true] %s23_s13 }
   0x4   :  { %s25_s15 = sshll.u32 %s433_s14, 4  ;;  %s434_s16 = smov 256   ;;  %s26_s15 = int_to_ptr.vmem [resolvable:$true] %s25_s15 }
   0x5   :  { %s435_s17 = smov 16  }
   0x6   :  { %31 = dma.hbm_to_vmem [thread:$0]  %s24_s13, 8192, %s26_s15, [#allocation4], %s434_s16, %s434_s16, %s435_s17  }
   0x7   :  { %431 = dma.done.wait [#allocation4], 8192  }
   0x8   :  { %432 = vsyncadd [#allocation4], 4294959104  ;;  %v81_v1 = vld [vmem:[#allocation3 + $0xf0] sm:$0xff]  ;;  %v82_v2 = vld [vmem:[#allocation3 + $0xf8] sm:$0xff]  ;;  %vm209_vm0 = vcmask 1041408   ;;  %vm272_vm6 = vcmask 1040384  }
   0x9   :  { %v79_v3 = vld [vmem:[#allocation3 + $0xe0] sm:$0xff]  ;;  %127 = vmatpush.msra.mxu0 %v81_v1  ;;  %167 = vmatpush.msra.mxu2 %v82_v2  ;;  %v113_v4 = vld [vmem:[#allocation3 + $0x1f0] sm:$0xff]  ;;  %v80_v5 = vld [vmem:[#allocation3 + $0xe8] sm:$0xff]  ;;  %vm381_vm8 = vcmask 517120   ;;  %vm390_vm9 = vcmask 1024  }
   0xa   :  { %v114_v6 = vld [vmem:[#allocation3 + $0x1f8] sm:$0xff]  ;;  %147 = vmatpush.msra.mxu1 %v113_v4  ;;  %v77_v7 = vld [vmem:[#allocation3 + $0xd0] sm:$0xff]  ;;  %v111_v8 = vld [vmem:[#allocation3 + $0x1e0] sm:$0xff] }
   0xb   :  { %187 = vmatpush.msra.mxu3 %v114_v6  ;;  %v78_v9 = vld [vmem:[#allocation3 + $0xd8] sm:$0xff]  ;;  %128 = vmatpush.msra.mxu0 %v79_v3  ;;  %v112_v10 = vld [vmem:[#allocation3 + $0x1e8] sm:$0xff]  ;;  %v109_v11 = vld [vmem:[#allocation3 + $0x1d0] sm:$0xff] }
   0xc   :  { %168 = vmatpush.msra.mxu2 %v80_v5  ;;  %148 = vmatpush.msra.mxu1 %v111_v8  ;;  %v75_v12 = vld [vmem:[#allocation3 + $0xc0] sm:$0xff]  ;;  %v76_v13 = vld [vmem:[#allocation3 + $0xc8] sm:$0xff]  ;;  %v110_v14 = vld [vmem:[#allocation3 + $0x1d8] sm:$0xff] }
   0xd   :  { %188 = vmatpush.msra.mxu3 %v112_v10  ;;  %129 = vmatpush.msra.mxu0 %v77_v7  ;;  %v107_v15 = vld [vmem:[#allocation3 + $0x1c0] sm:$0xff]  ;;  %v108_v16 = vld [vmem:[#allocation3 + $0x1c8] sm:$0xff]  ;;  %v73_v17 = vld [vmem:[#allocation3 + $0xb0] sm:$0xff] }
   0xe   :  { %169 = vmatpush.msra.mxu2 %v78_v9  ;;  %149 = vmatpush.msra.mxu1 %v109_v11  ;;  %v74_v18 = vld [vmem:[#allocation3 + $0xb8] sm:$0xff]  ;;  %v105_v19 = vld [vmem:[#allocation3 + $0x1b0] sm:$0xff]  ;;  %v71_v21 = vld [vmem:[#allocation3 + $0xa0] sm:$0xff] }
   0xf   :  { %189 = vmatpush.msra.mxu3 %v110_v14  ;;  %130 = vmatpush.msra.mxu0 %v75_v12  ;;  %v106_v20 = vld [vmem:[#allocation3 + $0x1b8] sm:$0xff]  ;;  %v72_v22 = vld [vmem:[#allocation3 + $0xa8] sm:$0xff]  ;;  %v103_v23 = vld [vmem:[#allocation3 + $0x1a0] sm:$0xff] }
  0x10   :  { %170 = vmatpush.msra.mxu2 %v76_v13  ;;  %150 = vmatpush.msra.mxu1 %v107_v15  ;;  %v104_v24 = vld [vmem:[#allocation3 + $0x1a8] sm:$0xff]  ;;  %v69_v25 = vld [vmem:[#allocation3 + $0x90] sm:$0xff]  ;;  %v70_v26 = vld [vmem:[#allocation3 + $0x98] sm:$0xff] }
  0x11   :  { %190 = vmatpush.msra.mxu3 %v108_v16  ;;  %131 = vmatpush.msra.mxu0 %v73_v17  ;;  %v101_v27 = vld [vmem:[#allocation3 + $0x190] sm:$0xff]  ;;  %v102_v28 = vld [vmem:[#allocation3 + $0x198] sm:$0xff]  ;;  %v67_v29 = vld [vmem:[#allocation3 + $0x80] sm:$0xff] }
  0x12   :  { %171 = vmatpush.msra.mxu2 %v74_v18  ;;  %151 = vmatpush.msra.mxu1 %v105_v19  ;;  %v68_v30 = vld [vmem:[#allocation3 + $0x88] sm:$0xff]  ;;  %v99_v31 = vld [vmem:[#allocation3 + $0x180] sm:$0xff]  ;;  %v65_v33 = vld [vmem:[#allocation3 + $0x70] sm:$0xff] }
  0x13   :  { %191 = vmatpush.msra.mxu3 %v106_v20  ;;  %132 = vmatpush.msra.mxu0 %v71_v21  ;;  %v100_v32 = vld [vmem:[#allocation3 + $0x188] sm:$0xff]  ;;  %v66_v34 = vld [vmem:[#allocation3 + $0x78] sm:$0xff]  ;;  %v97_v35 = vld [vmem:[#allocation3 + $0x170] sm:$0xff] }
  0x14   :  { %172 = vmatpush.msra.mxu2 %v72_v22  ;;  %152 = vmatpush.msra.mxu1 %v103_v23  ;;  %v98_v36 = vld [vmem:[#allocation3 + $0x178] sm:$0xff]  ;;  %v63_v37 = vld [vmem:[#allocation3 + $0x60] sm:$0xff]  ;;  %v64_v38 = vld [vmem:[#allocation3 + $0x68] sm:$0xff] }
  0x15   :  { %192 = vmatpush.msra.mxu3 %v104_v24  ;;  %133 = vmatpush.msra.mxu0 %v69_v25  ;;  %v95_v39 = vld [vmem:[#allocation3 + $0x160] sm:$0xff]  ;;  %v96_v40 = vld [vmem:[#allocation3 + $0x168] sm:$0xff]  ;;  %v61_v41 = vld [vmem:[#allocation3 + $0x50] sm:$0xff] }
  0x16   :  { %173 = vmatpush.msra.mxu2 %v70_v26  ;;  %153 = vmatpush.msra.mxu1 %v101_v27  ;;  %v62_v42 = vld [vmem:[#allocation3 + $0x58] sm:$0xff]  ;;  %v93_v43 = vld [vmem:[#allocation3 + $0x150] sm:$0xff]  ;;  %v59_v45 = vld [vmem:[#allocation3 + $0x40] sm:$0xff] }
  0x17   :  { %193 = vmatpush.msra.mxu3 %v102_v28  ;;  %134 = vmatpush.msra.mxu0 %v67_v29  ;;  %v94_v44 = vld [vmem:[#allocation3 + $0x158] sm:$0xff]  ;;  %v60_v46 = vld [vmem:[#allocation3 + $0x48] sm:$0xff]  ;;  %v57_v48 = vld [vmem:[#allocation3 + $0x30] sm:$0xff] }
  0x18   :  { %174 = vmatpush.msra.mxu2 %v68_v30  ;;  %154 = vmatpush.msra.mxu1 %v99_v31  ;;  %v50_v47 = vld [vmem:[%s631_s0] sm:$0xf]  ;;  %v91_v49 = vld [vmem:[#allocation3 + $0x140] sm:$0xff]  ;;  %v92_v50 = vld [vmem:[#allocation3 + $0x148] sm:$0xff] }
  0x19   :  { %194 = vmatpush.msra.mxu3 %v100_v32  ;;  %135 = vmatpush.msra.mxu0 %v65_v33  ;;  %122 = vst [vmem:[#allocation1] ss:$4 sm:$0xff] %v50_v47  ;;  %v58_v51 = vld [vmem:[#allocation3 + $0x38] sm:$0xff]  ;;  %v89_v52 = vld [vmem:[#allocation3 + $0x130] sm:$0xff]  ;;  %v55_v54 = vld [vmem:[#allocation3 + $0x20] sm:$0xff] }
  0x1a   :  { %175 = vmatpush.msra.mxu2 %v66_v34  ;;  %155 = vmatpush.msra.mxu1 %v97_v35  ;;  %v90_v53 = vld [vmem:[#allocation3 + $0x138] sm:$0xff]  ;;  %v56_v55 = vld [vmem:[#allocation3 + $0x28] sm:$0xff]  ;;  %v87_v56 = vld [vmem:[#allocation3 + $0x120] sm:$0xff] }
  0x1b   :  { %195 = vmatpush.msra.mxu3 %v98_v36  ;;  %136 = vmatpush.msra.mxu0 %v63_v37  ;;  %v88_v57 = vld [vmem:[#allocation3 + $0x128] sm:$0xff]  ;;  %v53_v58 = vld [vmem:[#allocation3 + $0x10] sm:$0xff]  ;;  %v54_v59 = vld [vmem:[#allocation3 + $0x18] sm:$0xff] }
  0x1c   :  { %176 = vmatpush.msra.mxu2 %v64_v38  ;;  %156 = vmatpush.msra.mxu1 %v95_v39  ;;  %v85_v60 = vld [vmem:[#allocation3 + $0x110] sm:$0xff]  ;;  %v86_v61 = vld [vmem:[#allocation3 + $0x118] sm:$0xff]  ;;  %v51_v62 = vld [vmem:[#allocation3] sm:$0xff] }
  0x1d   :  { %196 = vmatpush.msra.mxu3 %v96_v40  ;;  %137 = vmatpush.msra.mxu0 %v61_v41  ;;  %v52_v63 = vld [vmem:[#allocation3 + $0x8] sm:$0xff]  ;;  %v83_v1 = vld [vmem:[#allocation3 + $0x100] sm:$0xff]  ;;  %v115_v4 = vld [vmem:[%s633_s2] sm:$0x3] }
  0x1e   :  { %177 = vmatpush.msra.mxu2 %v62_v42  ;;  %157 = vmatpush.msra.mxu1 %v93_v43  ;;  %v84_v2 = vld [vmem:[#allocation3 + $0x108] sm:$0xff]  ;;  %v117_v5 = vperm.slane %v115_v4, 0  ;;  %v118_v10 = vperm.slane %v115_v4, 1  ;;  %v312_v38 = vld [vmem:[%s636_s5 + $0x68] sm:$0xff]  ;;  %v311_v43 = vld [vmem:[%s636_s5 + $0x60] sm:$0xff] }
  0x1f   :  { %197 = vmatpush.msra.mxu3 %v94_v44  ;;  %138 = vmatpush.msra.mxu0 %v59_v45  ;;  %v314_v30 = vld [vmem:[%s636_s5 + $0x78] sm:$0xff]  ;;  %v313_v34 = vld [vmem:[%s636_s5 + $0x70] sm:$0xff]  ;;  %v328_v39 = vld [vmem:[%s636_s5 + $0xe8] sm:$0xff] }
  0x20   :  { %178 = vmatpush.msra.mxu2 %v60_v46  ;;  %158 = vmatpush.msra.mxu1 %v91_v49  ;;  %v123_v0 = vld.sshfl [vmem:[#allocation1] sm:$0xff pattern:$0x73625140]  ;;  %v124_v3 = vld.sshfl [vmem:[#allocation1 + $0x8] sm:$0xff pattern:$0x73625140] }
  0x21   :  { %198 = vmatpush.msra.mxu3 %v92_v50  ;;  %139 = vmatpush.msra.mxu0 %v57_v48  ;;  %v330_v31 = vld [vmem:[%s636_s5 + $0xf8] sm:$0xff]  ;;  %v329_v35 = vld [vmem:[%s636_s5 + $0xf0] sm:$0xff]  ;;  %v327_v44 = vld [vmem:[%s636_s5 + $0xe0] sm:$0xff] }
  0x22   :  { %179 = vmatpush.msra.mxu2 %v58_v51  ;;  %159 = vmatpush.msra.mxu1 %v89_v52  ;;  %v310_v47 = vld [vmem:[%s636_s5 + $0x58] sm:$0xff]  ;;  %v309_v51 = vld [vmem:[%s636_s5 + $0x50] sm:$0xff] }
  0x23   :  { %199 = vmatpush.msra.mxu3 %v90_v53  ;;  %140 = vmatpush.msra.mxu0 %v55_v54  ;;  %v326_v48 = vld [vmem:[%s636_s5 + $0xd8] sm:$0xff]  ;;  %v325_v52 = vld [vmem:[%s636_s5 + $0xd0] sm:$0xff] }
  0x24   :  { %180 = vmatpush.msra.mxu2 %v56_v55  ;;  %160 = vmatpush.msra.mxu1 %v87_v56  ;;  %v308_v56 = vld [vmem:[%s636_s5 + $0x48] sm:$0xff]  ;;  %v305_v4 = vld [vmem:[%s636_s5 + $0x30] sm:$0xff] }
  0x25   :  { %200 = vmatpush.msra.mxu3 %v88_v57  ;;  %141 = vmatpush.msra.mxu0 %v53_v58  ;;  %v324_v57 = vld [vmem:[%s636_s5 + $0xc8] sm:$0xff] }
  0x26   :  { %181 = vmatpush.msra.mxu2 %v54_v59  ;;  %161 = vmatpush.msra.mxu1 %v85_v60  ;;  %v307_v60 = vld [vmem:[%s636_s5 + $0x40] sm:$0xff] }
  0x27   :  { %201 = vmatpush.msra.mxu3 %v86_v61  ;;  %142 = vmatpush.msra.mxu0 %v51_v62  ;;  %v323_v61 = vld [vmem:[%s636_s5 + $0xc0] sm:$0xff] }
  0x28   :  { %182 = vmatpush.msra.mxu2 %v52_v63  ;;  %143 = vmatmul.f32.vlgmr.msra.gmra.mxu0 %v123_v0 }
  0x29   :  { %183 = vmatmul.f32.vlgmr.msra.gmra.mxu2 %v123_v0  ;;  %162 = vmatpush.msra.mxu1 %v83_v1  ;;  %v306_v0 = vld [vmem:[%s636_s5 + $0x38] sm:$0xff] }
  0x2a   :  { %202 = vmatpush.msra.mxu3 %v84_v2  ;;  %163 = vmatmul.f32.vlgmr.msra.gmra.mxu1 %v124_v3  ;;  %v322_v1 = vld [vmem:[%s636_s5 + $0xb8] sm:$0xff] }
  0x2b   :  { %203 = vmatmul.f32.vlgmr.msra.gmra.mxu3 %v124_v3  ;;  %335 = vmatpush.msrb.mxu0 %v314_v30 }
  0x2c   :  { %355 = vmatpush.msrb.mxu1 %v330_v31 }
  0x2d   :  { %336 = vmatpush.msrb.mxu0 %v313_v34 }
  0x2e   :  { %356 = vmatpush.msrb.mxu1 %v329_v35 }
  0x2f   :  { %337 = vmatpush.msrb.mxu0 %v312_v38 }
  0x30   :  { %357 = vmatpush.msrb.mxu1 %v328_v39  ;;  %v268_v39 = vld [vmem:[%s634_s3] sm:$0x3] }
  0x31   :  { %338 = vmatpush.msrb.mxu0 %v311_v43 }
  0x32   :  { %358 = vmatpush.msrb.mxu1 %v327_v44 }
  0x33   :  { %339 = vmatpush.msrb.mxu0 %v310_v47 }
  0x34   :  { %359 = vmatpush.msrb.mxu1 %v326_v48 }
  0x35   :  { %340 = vmatpush.msrb.mxu0 %v309_v51 }
  0x36   :  { %360 = vmatpush.msrb.mxu1 %v325_v52 }
  0x37   :  { %341 = vmatpush.msrb.mxu0 %v308_v56 }
  0x38   :  { %361 = vmatpush.msrb.mxu1 %v324_v57 }
  0x39   :  { %342 = vmatpush.msrb.mxu0 %v307_v60 }
  0x3a   :  { %362 = vmatpush.msrb.mxu1 %v323_v61 }
  0x3b   :  { %343 = vmatpush.msrb.mxu0 %v306_v0  ;;  %v402_v0 = vld [vmem:[#allocation2] ss:$0 sm:$0xff] }
  0x3c   :  { %363 = vmatpush.msrb.mxu1 %v322_v1 }
  0x3d   :  { %344 = vmatpush.msrb.mxu0 %v305_v4 }
  0xa5   :  { %v144_v6 = vpop.f32.mrf.mxu0 }
  0xa6   :  { %v145_v7 = vadd.f32 %v144_v6, %v117_v5  ;;  %v321_v5 = vld [vmem:[%s636_s5 + $0xb0] sm:$0xff] }
  0xa7   :  { %v164_v8 = vpop.f32.mrf.mxu1  ;;  %364 = vmatpush.msrb.mxu1 %v321_v5 }
  0xa8   :  { %v165_v9 = vadd.f32 %v164_v8, %v145_v7  ;;  %v304_v8 = vld [vmem:[%s636_s5 + $0x28] sm:$0xff] }
  0xa9   :  { %345 = vmatpush.msrb.mxu0 %v304_v8 }
  0xaa   :  { %v498_v11 = vmax.f32 %v165_v9, 0.0  ;;  %v320_v9 = vld [vmem:[%s636_s5 + $0xa8] sm:$0xff] }
  0xab   :  { %365 = vmatpush.msrb.mxu1 %v320_v9 }
  0xac   :  { %v184_v12 = vpop.f32.mrf.mxu2  ;;  %v210_v13 = vsel %vm209_vm0, %v498_v11, 0.0 }
  0xad   :  { %v185_v14 = vadd.f32 %v184_v12, %v118_v10  ;;  %v211_v15 = vrot.slane %v210_v13, 4  ;;  %v303_v12 = vld [vmem:[%s636_s5 + $0x20] sm:$0xff] }
  0xae   :  { %v204_v16 = vpop.f32.mrf.mxu3  ;;  %346 = vmatpush.msrb.mxu0 %v303_v12 }
  0xaf   :  { %v205_v17 = vadd.f32 %v204_v16, %v185_v14  ;;  %v212_v18 = vadd.f32 %v211_v15, %v210_v13  ;;  %v319_v13 = vld [vmem:[%s636_s5 + $0xa0] sm:$0xff]  ;;  %v302_v14 = vld [vmem:[%s636_s5 + $0x18] sm:$0xff] }
  0xb0   :  { %366 = vmatpush.msrb.mxu1 %v319_v13  ;;  %v318_v15 = vld [vmem:[%s636_s5 + $0x98] sm:$0xff]  ;;  %347 = vmatpush.msrb.mxu0 %v302_v14 }
  0xb1   :  { %v502_v19 = vmax.f32 %v205_v17, 0.0  ;;  %v213_v20 = vrot.slane %v212_v18, 2  ;;  %v301_v17 = vld [vmem:[%s636_s5 + $0x10] sm:$0xff] }
  0xb2   :  { %367 = vmatpush.msrb.mxu1 %v318_v15  ;;  %348 = vmatpush.msrb.mxu0 %v301_v17 }
  0xb3   :  { %v217_v21 = vsel %vm209_vm0, %v502_v19, 0.0  ;;  %v214_v22 = vadd.f32 %v213_v20, %v212_v18  ;;  %v317_v18 = vld [vmem:[%s636_s5 + $0x90] sm:$0xff] }
  0xb4   :  { %v218_v23 = vrot.slane %v217_v21, 4  ;;  %368 = vmatpush.msrb.mxu1 %v317_v18 }
  0xb5   :  { %v215_v24 = vrot.slane %v214_v22, 1 }
  0xb6   :  { %v219_v25 = vadd.f32 %v218_v23, %v217_v21  ;;  %v300_v21 = vld [vmem:[%s636_s5 + $0x8] sm:$0xff] }
  0xb7   :  { %v216_v26 = vadd.f32 %v215_v24, %v214_v22  ;;  %v316_v22 = vld [vmem:[%s636_s5 + $0x88] sm:$0xff]  ;;  %v299_v24 = vld [vmem:[%s636_s5] sm:$0xff]  ;;  %349 = vmatpush.msrb.mxu0 %v300_v21 }
  0xb8   :  { %v220_v27 = vrot.slane %v219_v25, 2  ;;  %369 = vmatpush.msrb.mxu1 %v316_v22 }
  0xb9   :  { %v506_v28 = vmul.f32 0.5, %v216_v26  ;;  %350 = vmatpush.msrb.mxu0 %v299_v24 }
  0xba   :  { %v221_v29 = vadd.f32 %v220_v27, %v219_v25  ;;  %v315_v25 = vld [vmem:[%s636_s5 + $0x80] sm:$0xff] }
  0xbb   :  { %v226_v32 = vsub.f32 %v498_v11, %v506_v28  ;;  %370 = vmatpush.msrb.mxu1 %v315_v25 }
  0xbc   :  { %v222_v33 = vrot.slane %v221_v29, 1 }
  0xbd   :  { %v228_v36 = vmul.f32 %v226_v32, %v226_v32 }
  0xbe   :  { %v223_v37 = vadd.f32 %v222_v33, %v221_v29 }
  0xbf   :  { %v230_v40 = vsel %vm209_vm0, %v228_v36, 0.0 }
  0xc0   :  { %v529_v41 = vmul.f32 0.5, %v223_v37  ;;  %v231_v42 = vrot.slane %v230_v40, 4 }
  0xc2   :  { %v227_v45 = vsub.f32 %v502_v19, %v529_v41  ;;  %v232_v46 = vadd.f32 %v231_v42, %v230_v40 }
  0xc4   :  { %v229_v49 = vmul.f32 %v227_v45, %v227_v45  ;;  %v233_v50 = vrot.slane %v232_v46, 2 }
  0xc6   :  { %v237_v53 = vsel %vm209_vm0, %v229_v49, 0.0  ;;  %v234_v54 = vadd.f32 %v233_v50, %v232_v46  ;;  %v276_v49 = vld [vmem:[%s635_s4] sm:$0x3] }
  0xc7   :  { %v238_v55 = vrot.slane %v237_v53, 4 }
  0xc8   :  { %v235_v58 = vrot.slane %v234_v54, 1 }
  0xc9   :  { %v239_v59 = vadd.f32 %v238_v55, %v237_v53 }
  0xca   :  { %v236_v62 = vadd.f32 %v235_v58, %v234_v54 }
  0xcb   :  { %v240_v63 = vrot.slane %v239_v59, 2 }
  0xcc   :  { %v244_v2 = vmul.f32 0.5, %v236_v62 }
  0xcd   :  { %v241_v3 = vadd.f32 %v240_v63, %v239_v59 }
  0xce   :  { %v246_v6 = vadd.f32 1e-05, %v244_v2 }
  0xcf   :  { %v242_v7 = vrot.slane %v241_v3, 1 }
  0xd0   :  { %403 = vrsqrt.f32 %v246_v6  ;;  %vm254_vm5 = vweird.f32 %v246_v6 }
  0xd1   :  { %v243_v10 = vadd.f32 %v242_v7, %v241_v3 }
  0xd3   :  { %v245_v16 = vmul.f32 0.5, %v243_v10 }
  0xd5   :  { %v247_v20 = vadd.f32 1e-05, %v245_v16 }
  0xd6   :  { %v404_v23 = vpop.eup %403 }
  0xd7   :  { %405 = vrsqrt.f32 %v247_v20  ;;  %v249_v26 = vmul.f32 %v404_v23, %v246_v6  ;;  %vm255_vm2 = vweird.f32 %v404_v23  ;;  %vm264_vm3 = vweird.f32 %v247_v20 }
  0xd8   :  { %vm256_vm7 = vmor %vm254_vm5, %vm255_vm2 }
  0xd9   :  { %v250_v27 = vmul.f32 %v404_v23, %v249_v26 }
  0xdb   :  { %v251_v30 = vmul.f32 0.5, %v250_v27 }
  0xdd   :  { %v406_v29 = vpop.eup %405  ;;  %v252_v33 = vsub.f32 1.5, %v251_v30 }
  0xde   :  { %v259_v31 = vmul.f32 %v406_v29, %v247_v20  ;;  %vm265_vm1 = vweird.f32 %v406_v29 }
  0xdf   :  { %v253_v36 = vmul.f32 %v404_v23, %v252_v33  ;;  %vm266_vm4 = vmor %vm264_vm3, %vm265_vm1 }
  0xe0   :  { %v260_v32 = vmul.f32 %v406_v29, %v259_v31 }
  0xe1   :  { %v257_v42 = vsel %vm256_vm7, %v404_v23, %v253_v36 }
  0xe2   :  { %v261_v34 = vmul.f32 0.5, %v260_v32 }
  0xe4   :  { %v262_v35 = vsub.f32 1.5, %v261_v34 }
  0xe6   :  { %v263_v37 = vmul.f32 %v406_v29, %v262_v35 }
  0xe8   :  { %v267_v38 = vsel %vm266_vm4, %v406_v29, %v263_v37 }
  0xe9   :  { %v271_v40 = vrot.slane %v267_v38, 7 }
  0xeb   :  { %v273_v43 = vsel %vm272_vm6, %v257_v42, %v271_v40 }
  0xec   :  { %v275_v44 = vmul.f32 %v273_v43, %v268_v39 }
  0xee   :  { %v279_v45 = vperm.slane %v275_v44, 1  ;;  %v278_v46 = vperm.slane %v275_v44, 0 }
  0xf0   :  { %v283_v47 = vmul.f32 %v279_v45, %v529_v41  ;;  %v282_v50 = vmul.f32 %v278_v46, %v506_v28  ;;  %v291_v53 = vmul.f32 %v279_v45, %v502_v19  ;;  %v290_v54 = vmul.f32 %v278_v46, %v498_v11  ;;  %v400_v41 = vld [vmem:[%s637_s6] ss:$0 sm:$0xff] }
  0xf1   :  { %v401_v19 = vld [vmem:[%s638_s7] ss:$0 sm:$0xff] }
  0xf2   :  { %v286_v48 = vrot.slane %v283_v47, 7 }
  0xf4   :  { %v287_v51 = vsel %vm272_vm6, %v282_v50, %v286_v48 }
  0xf5   :  { %v289_v52 = vsub.f32 %v276_v49, %v287_v51 }
  0xf7   :  { %v293_v55 = vperm.slane %v289_v52, 0  ;;  %v294_v56 = vperm.slane %v289_v52, 1 }
  0xf9   :  { %v297_v57 = vadd.f32 %v293_v55, %v290_v54  ;;  %v298_v58 = vadd.f32 %v294_v56, %v291_v53 }
  0xfb   :  { %351 = vmatmul.f32.vlgmr.msrb.gmra.mxu0 %v297_v57  ;;  %371 = vmatmul.f32.vlgmr.msrb.gmra.mxu1 %v298_v58 }
 0x178   :  { %v352_v59 = vpop.f32.mrf.mxu0  ;;  %v372_v61 = vpop.f32.mrf.mxu1 }
 0x179   :  { %v353_v60 = vadd.f32 %v400_v41, %v352_v59 }
 0x17b   :  { %v373_v28 = vadd.f32 %v372_v61, %v353_v60 }
 0x17d   :  { %v375_v62 = vmax.f32 %v373_v28, 0.0 }
 0x17f   :  { %v380_v11 = vmul.f32 %v401_v19, %v375_v62 }
 0x181   :  { %v382_v63 = vsel %vm381_vm8, %v380_v11, 0.0 }
 0x182   :  { %383 = vadd.xlane.f32.xlu0 %v382_v63 }
 0x1f5   :  { %v384_v1 = vpop.xlane.xlu0 %383 }
 0x1f6   :  { %v389_v2 = vadd.f32 %v402_v0, %v384_v1 }
 0x1f8   :  { %391 = vst.msk [vmem:[%s640_s9] sm:$0x3] %vm390_vm9, %v389_v2 }
 0x1f9   :  { %396 = vsyncpa [#allocation4], 1 }

</bundles_post_ra>
